<compile_context>
chip_gen: v5e
topology: v5e:2x2
jax: 0.10.0
libtpu: 0.0.40
codegen_flags: <defaults>
</compile_context>

<pallas_src>
import functools

import jax
import jax.numpy as jnp
from jax.experimental import pallas as pl
from jax.experimental.pallas import tpu as pltpu


_TILE_B_MAX = 4096   # batch rows per grid step (multiple of 128)


def _round_up(n, m):
    return ((n + m - 1) // m) * m


def _pick_tile_b(b_pad):
    """Largest multiple-of-128 tile that divides b_pad, capped at _TILE_B_MAX,
    preferring >=2 grid steps (so v7x can shard the parallel axis over both TCs)."""
    n128 = b_pad // 128
    max_k = min(_TILE_B_MAX // 128, n128)
    if n128 >= 2:
        max_k = min(max_k, n128 // 2)
    max_k = max(max_k, 1)
    for k in range(max_k, 0, -1):
        if n128 % k == 0:
            return 128 * k
    return 128


def _vae_kernel(x_ref, eps_ref,
                w1_ref, b1_ref,
                w2mu_ref, b2mu_ref,
                w2lv_ref, b2lv_ref,
                w3_ref, b3_ref,
                w4_ref, b4_ref,
                recon_ref, mu_ref, logvar_ref,
                *, latent_dim, input_dim):
    # Blocks arrive in natural (batch, feature) layout straight from HBM.
    # Heavy math runs in (feature, batch) layout: lane-dense intermediates,
    # compact matmul results, dense EUP exp.  The small transposes use the XLU.
    xT = x_ref[...].T                                                       # (Dp, TB)
    epsT = eps_ref[...].T                                                   # (Lp, TB)

    # ---- encoder: Linear(D, 32) -> ReLU -> Linear(32, 2L) split into mu / log_var ----
    h = jnp.maximum(
        jnp.dot(w1_ref[...], xT, preferred_element_type=jnp.float32) + b1_ref[...], 0.0)
    muT = jnp.dot(w2mu_ref[...], h, preferred_element_type=jnp.float32) + b2mu_ref[...]   # (Lp, TB)
    lvT = jnp.dot(w2lv_ref[...], h, preferred_element_type=jnp.float32) + b2lv_ref[...]   # (Lp, TB)

    # ---- reparameterization: z = mu + exp(0.5 * log_var) * eps (f32 VPU/EUP) ----
    zT = muT + jnp.exp(0.5 * lvT) * epsT                                    # (Lp, TB)

    # ---- decoder: Linear(L, 32) -> ReLU -> Linear(32, D) ----
    h2 = jnp.maximum(
        jnp.dot(w3_ref[...], zT, preferred_element_type=jnp.float32) + b3_ref[...], 0.0)
    reconT = jnp.dot(w4_ref[...], h2, preferred_element_type=jnp.float32) + b4_ref[...]   # (Dp, TB)

    # Transpose back to natural (batch, feature) layout and store; zero-padded
    # feature rows are dropped by the lane slice.
    recon_ref[...] = reconT.T[:, :input_dim]
    mu_ref[...] = muT.T[:, :latent_dim]
    logvar_ref[...] = lvT.T[:, :latent_dim]


def vae_forward(x, eps, params, *, latent_dim):
    """Full VAE forward in one gridded Pallas call.

    x:   (B, input_dim) float32
    eps: (B, latent_dim) float32  -- the randn_like noise, sampled outside the kernel.
    params: PyTorch-convention weights: w* of shape (out, in), b* of shape (out,).
    Returns (reconstructed (B, input_dim), mu (B, latent), log_var (B, latent)).
    """
    batch, input_dim = x.shape
    f32 = jnp.float32

    in_p = _round_up(input_dim, 8)      # tile-aligned feature dims (sublane multiple)
    lat_p = _round_up(latent_dim, 8)

    b_pad = _round_up(batch, 128)       # pad batch only to a lane multiple
    tile_b = _pick_tile_b(b_pad)
    grid = (b_pad // tile_b,)

    # Outputs are exactly (batch, feat) unless a single block would exceed the batch
    # (tiny batches < 128), in which case we allocate padded rows and slice once.
    out_rows = batch if batch >= tile_b else b_pad

    # Inputs: natural layout, zero-padded rows/cols (single cheap pad, no transposes).
    x_p = jnp.pad(x.astype(f32), ((0, b_pad - batch), (0, in_p - input_dim)))
    eps_p = jnp.pad(eps.astype(f32), ((0, b_pad - batch), (0, lat_p - latent_dim)))

    # One-time weight prep (tiny): PyTorch (out, in) is already the compute layout;
    # zero-pad ragged feature dims and split encoder layer 2 into mu / log_var halves.
    w1p = jnp.pad(params["w1"].astype(f32), ((0, 0), (0, in_p - input_dim)))
    b1 = params["b1"].astype(f32).reshape(-1, 1)
    w2mu = jnp.pad(params["w2"][:latent_dim].astype(f32), ((0, lat_p - latent_dim), (0, 0)))
    b2mu = jnp.pad(params["b2"][:latent_dim].astype(f32), (0, lat_p - latent_dim)).reshape(-1, 1)
    w2lv = jnp.pad(params["w2"][latent_dim:].astype(f32), ((0, lat_p - latent_dim), (0, 0)))
    b2lv = jnp.pad(params["b2"][latent_dim:].astype(f32), (0, lat_p - latent_dim)).reshape(-1, 1)
    w3p = jnp.pad(params["w3"].astype(f32), ((0, 0), (0, lat_p - latent_dim)))
    b3 = params["b3"].astype(f32).reshape(-1, 1)
    w4p = jnp.pad(params["w4"].astype(f32), ((0, in_p - input_dim), (0, 0)))
    b4p = jnp.pad(params["b4"].astype(f32), (0, in_p - input_dim)).reshape(-1, 1)

    weights = (w1p, b1, w2mu, b2mu, w2lv, b2lv, w3p, b3, w4p, b4p)

    def streamed(feat):
        # Streams along the batch (row) axis; feature axis is the full dim.
        return pl.BlockSpec((tile_b, feat), lambda i: (i, 0))

    def pinned(arr):
        # Weights/biases: same block every grid step -> stay VMEM-resident.
        return pl.BlockSpec(arr.shape, lambda i: (0, 0))

    in_specs = [streamed(in_p), streamed(lat_p)] + [pinned(w) for w in weights]
    out_specs = (streamed(input_dim), streamed(latent_dim), streamed(latent_dim))
    out_shape = (
        jax.ShapeDtypeStruct((out_rows, input_dim), f32),
        jax.ShapeDtypeStruct((out_rows, latent_dim), f32),
        jax.ShapeDtypeStruct((out_rows, latent_dim), f32),
    )

    kernel = functools.partial(_vae_kernel, latent_dim=latent_dim, input_dim=input_dim)

    recon, mu, log_var = pl.pallas_call(
        kernel,
        out_shape=out_shape,
        grid=grid,
        in_specs=in_specs,
        out_specs=out_specs,
        compiler_params=pltpu.CompilerParams(
            dimension_semantics=("parallel",),        # shard batch across v7x's 2 TCs
            vmem_limit_bytes=48 * 1024 * 1024,        # big tiles; safe vs v5e 16MiB default
        ),                                            # and v7x's 64 MiB physical VMEM
    )(x_p, eps_p, *weights)

    if out_rows != batch:
        recon, mu, log_var = recon[:batch], mu[:batch], log_var[:batch]
    return recon, mu, log_var


def init_vae_params(key, input_dim, latent_dim=5, hidden=32):
    """Deterministic synthetic parameters, PyTorch nn.Linear convention: W (out, in), b (out,)."""
    ks = jax.random.split(key, 8)
    scale = 0.1

    def lin(kw, kb, out_f, in_f):
        w = scale * jax.random.normal(kw, (out_f, in_f), jnp.float32)
        b = scale * jax.random.normal(kb, (out_f,), jnp.float32)
        return w, b

    w1, b1 = lin(ks[0], ks[1], hidden, input_dim)            # encoder Linear(D, 32)
    w2, b2 = lin(ks[2], ks[3], 2 * latent_dim, hidden)       # encoder Linear(32, 2L)
    w3, b3 = lin(ks[4], ks[5], hidden, latent_dim)           # decoder Linear(L, 32)
    w4, b4 = lin(ks[6], ks[7], input_dim, hidden)            # decoder Linear(32, D)
    return dict(w1=w1, b1=b1, w2=w2, b2=b2, w3=w3, b3=b3, w4=w4, b4=b4)


def vae_forward_reference(x, eps, params, *, latent_dim):
    """Plain-JAX reference (matches the PyTorch module exactly)."""
    h = jnp.maximum(x @ params["w1"].T + params["b1"], 0.0)
    enc = h @ params["w2"].T + params["b2"]
    mu, log_var = enc[:, :latent_dim], enc[:, latent_dim:]
    z = mu + jnp.exp(0.5 * log_var) * eps
    h2 = jnp.maximum(z @ params["w3"].T + params["b3"], 0.0)
    recon = h2 @ params["w4"].T + params["b4"]
    return recon, mu, log_var


if __name__ == "__main__":
    batch = 200        # exercises padding to 128 multiple + 2 grid steps + ragged last block
    input_dim = 16     # stand-in for X_normal.drop(columns='label').shape[1]
    latent_dim = 5
    hidden = 32

    key = jax.random.PRNGKey(0)
    k_params, k_x, k_eps = jax.random.split(key, 3)

    params = init_vae_params(k_params, input_dim, latent_dim, hidden)
    x = jax.random.normal(k_x, (batch, input_dim), jnp.float32)
    # TODO(synk): torch.randn_like(std) equivalent -- noise is sampled outside the kernel.
    eps = jax.random.normal(k_eps, (batch, latent_dim), jnp.float32)

    recon, mu, log_var = vae_forward(x, eps, params, latent_dim=latent_dim)
    recon = jax.block_until_ready(recon)
    mu = jax.block_until_ready(mu)
    log_var = jax.block_until_ready(log_var)

    # sanity check against the pure-JAX reference
    r_ref, mu_ref, lv_ref = vae_forward_reference(x, eps, params, latent_dim=latent_dim)
    assert recon.shape == (batch, input_dim)
    assert mu.shape == (batch, latent_dim) and log_var.shape == (batch, latent_dim)
    assert jnp.allclose(recon, r_ref, atol=1e-5), "reconstruction mismatch"
    assert jnp.allclose(mu, mu_ref, atol=1e-5), "mu mismatch"
    assert jnp.allclose(log_var, lv_ref, atol=1e-5), "log_var mismatch"

    print("KERNEL_OK")
</pallas_src>

<mosaic_0001>
module attributes {stable_mosaic.version = 11 : i64} {
  func.func @_vae_kernel(%arg0: i32, %arg1: memref<128x16xf32, #tpu.memory_space<vmem>>, %arg2: memref<128x8xf32, #tpu.memory_space<vmem>>, %arg3: memref<32x16xf32, #tpu.memory_space<vmem>>, %arg4: memref<32x1xf32, #tpu.memory_space<vmem>>, %arg5: memref<8x32xf32, #tpu.memory_space<vmem>>, %arg6: memref<8x1xf32, #tpu.memory_space<vmem>>, %arg7: memref<8x32xf32, #tpu.memory_space<vmem>>, %arg8: memref<8x1xf32, #tpu.memory_space<vmem>>, %arg9: memref<32x8xf32, #tpu.memory_space<vmem>>, %arg10: memref<32x1xf32, #tpu.memory_space<vmem>>, %arg11: memref<16x32xf32, #tpu.memory_space<vmem>>, %arg12: memref<16x1xf32, #tpu.memory_space<vmem>>, %arg13: memref<128x16xf32, #tpu.memory_space<vmem>>, %arg14: memref<128x5xf32, #tpu.memory_space<vmem>>, %arg15: memref<128x5xf32, #tpu.memory_space<vmem>>) attributes {dimension_semantics = [#tpu.dimension_semantics<parallel>], iteration_bounds = array<i64: 2>, scalar_prefetch = 0 : i64, scratch_operands = 0 : i64, tpu.core_type = #tpu.core_type<tc>, window_params = [{transform_indices = @transform_0, window_bounds = array<i64: 128, 16>}, {transform_indices = @transform_1, window_bounds = array<i64: 128, 8>}, {pipeline_mode = #tpu.pipeline_mode<synchronous>, transform_indices = @transform_2, window_bounds = array<i64: 32, 16>}, {pipeline_mode = #tpu.pipeline_mode<synchronous>, transform_indices = @transform_3, window_bounds = array<i64: 32, 1>}, {pipeline_mode = #tpu.pipeline_mode<synchronous>, transform_indices = @transform_4, window_bounds = array<i64: 8, 32>}, {pipeline_mode = #tpu.pipeline_mode<synchronous>, transform_indices = @transform_5, window_bounds = array<i64: 8, 1>}, {pipeline_mode = #tpu.pipeline_mode<synchronous>, transform_indices = @transform_6, window_bounds = array<i64: 8, 32>}, {pipeline_mode = #tpu.pipeline_mode<synchronous>, transform_indices = @transform_7, window_bounds = array<i64: 8, 1>}, {pipeline_mode = #tpu.pipeline_mode<synchronous>, transform_indices = @transform_8, window_bounds = array<i64: 32, 8>}, {pipeline_mode = #tpu.pipeline_mode<synchronous>, transform_indices = @transform_9, window_bounds = array<i64: 32, 1>}, {pipeline_mode = #tpu.pipeline_mode<synchronous>, transform_indices = @transform_10, window_bounds = array<i64: 16, 32>}, {pipeline_mode = #tpu.pipeline_mode<synchronous>, transform_indices = @transform_11, window_bounds = array<i64: 16, 1>}, {transform_indices = @transform_12, window_bounds = array<i64: 128, 16>}, {transform_indices = @transform_13, window_bounds = array<i64: 128, 5>}, {transform_indices = @transform_14, window_bounds = array<i64: 128, 5>}]} {
    %c0 = arith.constant 0 : index
    %c0_0 = arith.constant 0 : index
    %0 = vector.load %arg1[%c0, %c0_0] : memref<128x16xf32, #tpu.memory_space<vmem>>, vector<128x16xf32>
    %1 = tpu.transpose %0, [1, 0] : vector<128x16xf32> -> vector<16x128xf32>
    %c0_1 = arith.constant 0 : index
    %c0_2 = arith.constant 0 : index
    %2 = vector.load %arg2[%c0_1, %c0_2] : memref<128x8xf32, #tpu.memory_space<vmem>>, vector<128x8xf32>
    %3 = tpu.transpose %2, [1, 0] : vector<128x8xf32> -> vector<8x128xf32>
    %c0_3 = arith.constant 0 : index
    %c0_4 = arith.constant 0 : index
    %4 = vector.load %arg3[%c0_3, %c0_4] : memref<32x16xf32, #tpu.memory_space<vmem>>, vector<32x16xf32>
    %cst = arith.constant dense<0.000000e+00> : vector<32x128xf32>
    %5 = tpu.matmul %4, %1, %cst {dimension_numbers = #tpu.dot_dimension_numbers<[1], [0], [0], [1], [0, 0, 1, 1], [], []>} : vector<32x16xf32>, vector<16x128xf32>, vector<32x128xf32> -> vector<32x128xf32>
    %c0_5 = arith.constant 0 : index
    %c0_6 = arith.constant 0 : index
    %6 = vector.load %arg4[%c0_5, %c0_6] : memref<32x1xf32, #tpu.memory_space<vmem>>, vector<32x1xf32>
    %7 = vector.broadcast %6 : vector<32x1xf32> to vector<32x128xf32>
    %8 = arith.addf %5, %7 : vector<32x128xf32>
    %cst_7 = arith.constant 0.000000e+00 : f32
    %9 = vector.broadcast %cst_7 : f32 to vector<32x128xf32>
    %10 = arith.maximumf %8, %9 : vector<32x128xf32>
    %c0_8 = arith.constant 0 : index
    %c0_9 = arith.constant 0 : index
    %11 = vector.load %arg5[%c0_8, %c0_9] : memref<8x32xf32, #tpu.memory_space<vmem>>, vector<8x32xf32>
    %cst_10 = arith.constant dense<0.000000e+00> : vector<8x128xf32>
    %12 = tpu.matmul %11, %10, %cst_10 {dimension_numbers = #tpu.dot_dimension_numbers<[1], [0], [0], [1], [0, 0, 1, 1], [], []>} : vector<8x32xf32>, vector<32x128xf32>, vector<8x128xf32> -> vector<8x128xf32>
    %c0_11 = arith.constant 0 : index
    %c0_12 = arith.constant 0 : index
    %13 = vector.load %arg6[%c0_11, %c0_12] : memref<8x1xf32, #tpu.memory_space<vmem>>, vector<8x1xf32>
    %14 = vector.broadcast %13 : vector<8x1xf32> to vector<8x128xf32>
    %15 = arith.addf %12, %14 : vector<8x128xf32>
    %c0_13 = arith.constant 0 : index
    %c0_14 = arith.constant 0 : index
    %16 = vector.load %arg7[%c0_13, %c0_14] : memref<8x32xf32, #tpu.memory_space<vmem>>, vector<8x32xf32>
    %cst_15 = arith.constant dense<0.000000e+00> : vector<8x128xf32>
    %17 = tpu.matmul %16, %10, %cst_15 {dimension_numbers = #tpu.dot_dimension_numbers<[1], [0], [0], [1], [0, 0, 1, 1], [], []>} : vector<8x32xf32>, vector<32x128xf32>, vector<8x128xf32> -> vector<8x128xf32>
    %c0_16 = arith.constant 0 : index
    %c0_17 = arith.constant 0 : index
    %18 = vector.load %arg8[%c0_16, %c0_17] : memref<8x1xf32, #tpu.memory_space<vmem>>, vector<8x1xf32>
    %19 = vector.broadcast %18 : vector<8x1xf32> to vector<8x128xf32>
    %20 = arith.addf %17, %19 : vector<8x128xf32>
    %cst_18 = arith.constant 5.000000e-01 : f32
    %21 = vector.broadcast %cst_18 : f32 to vector<8x128xf32>
    %22 = arith.mulf %21, %20 : vector<8x128xf32>
    %23 = math.exp %22 : vector<8x128xf32>
    %24 = arith.mulf %23, %3 : vector<8x128xf32>
    %25 = arith.addf %15, %24 : vector<8x128xf32>
    %c0_19 = arith.constant 0 : index
    %c0_20 = arith.constant 0 : index
    %26 = vector.load %arg9[%c0_19, %c0_20] : memref<32x8xf32, #tpu.memory_space<vmem>>, vector<32x8xf32>
    %cst_21 = arith.constant dense<0.000000e+00> : vector<32x128xf32>
    %27 = tpu.matmul %26, %25, %cst_21 {dimension_numbers = #tpu.dot_dimension_numbers<[1], [0], [0], [1], [0, 0, 1, 1], [], []>} : vector<32x8xf32>, vector<8x128xf32>, vector<32x128xf32> -> vector<32x128xf32>
    %c0_22 = arith.constant 0 : index
    %c0_23 = arith.constant 0 : index
    %28 = vector.load %arg10[%c0_22, %c0_23] : memref<32x1xf32, #tpu.memory_space<vmem>>, vector<32x1xf32>
    %29 = vector.broadcast %28 : vector<32x1xf32> to vector<32x128xf32>
    %30 = arith.addf %27, %29 : vector<32x128xf32>
    %cst_24 = arith.constant 0.000000e+00 : f32
    %31 = vector.broadcast %cst_24 : f32 to vector<32x128xf32>
    %32 = arith.maximumf %30, %31 : vector<32x128xf32>
    %c0_25 = arith.constant 0 : index
    %c0_26 = arith.constant 0 : index
    %33 = vector.load %arg11[%c0_25, %c0_26] : memref<16x32xf32, #tpu.memory_space<vmem>>, vector<16x32xf32>
    %cst_27 = arith.constant dense<0.000000e+00> : vector<16x128xf32>
    %34 = tpu.matmul %33, %32, %cst_27 {dimension_numbers = #tpu.dot_dimension_numbers<[1], [0], [0], [1], [0, 0, 1, 1], [], []>} : vector<16x32xf32>, vector<32x128xf32>, vector<16x128xf32> -> vector<16x128xf32>
    %c0_28 = arith.constant 0 : index
    %c0_29 = arith.constant 0 : index
    %35 = vector.load %arg12[%c0_28, %c0_29] : memref<16x1xf32, #tpu.memory_space<vmem>>, vector<16x1xf32>
    %36 = vector.broadcast %35 : vector<16x1xf32> to vector<16x128xf32>
    %37 = arith.addf %34, %36 : vector<16x128xf32>
    %38 = tpu.transpose %37, [1, 0] : vector<16x128xf32> -> vector<128x16xf32>
    %c0_30 = arith.constant 0 : index
    %c0_31 = arith.constant 0 : index
    %39 = vector.load %arg13[%c0_30, %c0_31] : memref<128x16xf32, #tpu.memory_space<vmem>>, vector<128x16xf32>
    tpu.vector_store %arg13[%c0_30, %c0_31], %38 {strides = array<i32>} : memref<128x16xf32, #tpu.memory_space<vmem>>, vector<128x16xf32>,
    %40 = tpu.transpose %15, [1, 0] : vector<8x128xf32> -> vector<128x8xf32>
    %41 = vector.extract_strided_slice %40 {offsets = [0, 0], sizes = [128, 5], strides = [1, 1]} : vector<128x8xf32> to vector<128x5xf32>
    %c0_32 = arith.constant 0 : index
    %c0_33 = arith.constant 0 : index
    %42 = vector.load %arg14[%c0_32, %c0_33] : memref<128x5xf32, #tpu.memory_space<vmem>>, vector<128x5xf32>
    tpu.vector_store %arg14[%c0_32, %c0_33], %41 {strides = array<i32>} : memref<128x5xf32, #tpu.memory_space<vmem>>, vector<128x5xf32>,
    %43 = tpu.transpose %20, [1, 0] : vector<8x128xf32> -> vector<128x8xf32>
    %44 = vector.extract_strided_slice %43 {offsets = [0, 0], sizes = [128, 5], strides = [1, 1]} : vector<128x8xf32> to vector<128x5xf32>
    %c0_34 = arith.constant 0 : index
    %c0_35 = arith.constant 0 : index
    %45 = vector.load %arg15[%c0_34, %c0_35] : memref<128x5xf32, #tpu.memory_space<vmem>>, vector<128x5xf32>
    tpu.vector_store %arg15[%c0_34, %c0_35], %44 {strides = array<i32>} : memref<128x5xf32, #tpu.memory_space<vmem>>, vector<128x5xf32>,
    return
  }
  func.func @transform_0(%arg0: i32) -> (i32, i32) {
    %c0_i32 = arith.constant 0 : i32
    %c0_i32_0 = arith.constant 0 : i32
    return %arg0, %c0_i32 : i32, i32
  }
  func.func @transform_1(%arg0: i32) -> (i32, i32) {
    %c0_i32 = arith.constant 0 : i32
    %c0_i32_0 = arith.constant 0 : i32
    return %arg0, %c0_i32 : i32, i32
  }
  func.func @transform_2(%arg0: i32) -> (i32, i32) {
    %c0_i32 = arith.constant 0 : i32
    %c0_i32_0 = arith.constant 0 : i32
    %c0_i32_1 = arith.constant 0 : i32
    return %c0_i32, %c0_i32_0 : i32, i32
  }
  func.func @transform_3(%arg0: i32) -> (i32, i32) {
    %c0_i32 = arith.constant 0 : i32
    %c0_i32_0 = arith.constant 0 : i32
    %c0_i32_1 = arith.constant 0 : i32
    return %c0_i32, %c0_i32_0 : i32, i32
  }
  func.func @transform_4(%arg0: i32) -> (i32, i32) {
    %c0_i32 = arith.constant 0 : i32
    %c0_i32_0 = arith.constant 0 : i32
    %c0_i32_1 = arith.constant 0 : i32
    return %c0_i32, %c0_i32_0 : i32, i32
  }
  func.func @transform_5(%arg0: i32) -> (i32, i32) {
    %c0_i32 = arith.constant 0 : i32
    %c0_i32_0 = arith.constant 0 : i32
    %c0_i32_1 = arith.constant 0 : i32
    return %c0_i32, %c0_i32_0 : i32, i32
  }
  func.func @transform_6(%arg0: i32) -> (i32, i32) {
    %c0_i32 = arith.constant 0 : i32
    %c0_i32_0 = arith.constant 0 : i32
    %c0_i32_1 = arith.constant 0 : i32
    return %c0_i32, %c0_i32_0 : i32, i32
  }
  func.func @transform_7(%arg0: i32) -> (i32, i32) {
    %c0_i32 = arith.constant 0 : i32
    %c0_i32_0 = arith.constant 0 : i32
    %c0_i32_1 = arith.constant 0 : i32
    return %c0_i32, %c0_i32_0 : i32, i32
  }
  func.func @transform_8(%arg0: i32) -> (i32, i32) {
    %c0_i32 = arith.constant 0 : i32
    %c0_i32_0 = arith.constant 0 : i32
    %c0_i32_1 = arith.constant 0 : i32
    return %c0_i32, %c0_i32_0 : i32, i32
  }
  func.func @transform_9(%arg0: i32) -> (i32, i32) {
    %c0_i32 = arith.constant 0 : i32
    %c0_i32_0 = arith.constant 0 : i32
    %c0_i32_1 = arith.constant 0 : i32
    return %c0_i32, %c0_i32_0 : i32, i32
  }
  func.func @transform_10(%arg0: i32) -> (i32, i32) {
    %c0_i32 = arith.constant 0 : i32
    %c0_i32_0 = arith.constant 0 : i32
    %c0_i32_1 = arith.constant 0 : i32
    return %c0_i32, %c0_i32_0 : i32, i32
  }
  func.func @transform_11(%arg0: i32) -> (i32, i32) {
    %c0_i32 = arith.constant 0 : i32
    %c0_i32_0 = arith.constant 0 : i32
    %c0_i32_1 = arith.constant 0 : i32
    return %c0_i32, %c0_i32_0 : i32, i32
  }
  func.func @transform_12(%arg0: i32) -> (i32, i32) {
    %c0_i32 = arith.constant 0 : i32
    %c0_i32_0 = arith.constant 0 : i32
    return %arg0, %c0_i32 : i32, i32
  }
  func.func @transform_13(%arg0: i32) -> (i32, i32) {
    %c0_i32 = arith.constant 0 : i32
    %c0_i32_0 = arith.constant 0 : i32
    return %arg0, %c0_i32 : i32, i32
  }
  func.func @transform_14(%arg0: i32) -> (i32, i32) {
    %c0_i32 = arith.constant 0 : i32
    %c0_i32_0 = arith.constant 0 : i32
    return %arg0, %c0_i32 : i32, i32
  }
}

</mosaic_0001>

<bundles_post_ra>
// kernel: tpu_custom_call.1
= control target key start
LH: loop header
LB: loop body
LE: loop exit
PB: predicated region body
PF: predicated region fallthrough
CT: control target
= control target key end

     0   :  { %s3011_s0 = inlined_call_operand.vmem [shape: f32[256,16], index: 0, kind: input, shape index: {}]   ;;  %s3012_s1 = inlined_call_operand.vmem [shape: f32[256,8], index: 1, kind: input, shape index: {}]   ;;  %s3013_s2 = inlined_call_operand.vmem [shape: f32[32,16], index: 2, kind: input, shape index: {}]   ;;  %s3014_s3 = inlined_call_operand.vmem [shape: f32[32,1], index: 3, kind: input, shape index: {}]   ;;  %s3015_s4 = inlined_call_operand.vmem [shape: f32[8,32], index: 4, kind: input, shape index: {}]   ;;  %s3016_s5 = inlined_call_operand.vmem [shape: f32[8,1], index: 5, kind: input, shape index: {}]   ;;  %s3017_s6 = inlined_call_operand.vmem [shape: f32[8,32], index: 6, kind: input, shape index: {}]   ;;  %s3018_s7 = inlined_call_operand.vmem [shape: f32[8,1], index: 7, kind: input, shape index: {}]   ;;  %s3019_s8 = inlined_call_operand.vmem [shape: f32[32,8], index: 8, kind: input, shape index: {}]   ;;  %s3020_s9 = inlined_call_operand.vmem [shape: f32[32,1], index: 9, kind: input, shape index: {}]   ;;  %s3021_s10 = inlined_call_operand.vmem [shape: f32[16,32], index: 10, kind: input, shape index: {}]   ;;  %s3022_s11 = inlined_call_operand.vmem [shape: f32[16,1], index: 11, kind: input, shape index: {}]   ;;  %s3023_s12 = inlined_call_operand.vmem [shape: f32[200,16], index: 12, kind: output, shape index: {0}]   ;;  %s3024_s13 = inlined_call_operand.vmem [shape: f32[200,5], index: 13, kind: output, shape index: {1}]   ;;  %s3025_s14 = inlined_call_operand.vmem [shape: f32[200,5], index: 14, kind: output, shape index: {2}]  }
   0x1   :  { %3027 = sst [smem:[#allocation5_spill]] %s3011_s0 }
   0x2   :  { %3028 = sst [smem:[#allocation6_spill]] %s3012_s1 }
   0x3   :  { %3029 = sst [smem:[#allocation7_spill]] %s3013_s2 }
   0x4   :  { %3030 = sst [smem:[#allocation8_spill]] %s3014_s3 }
   0x5   :  { %3031 = sst [smem:[#allocation9_spill]] %s3015_s4 }
   0x6   :  { %3032 = sst [smem:[#allocation10_spill]] %s3016_s5 }
   0x7   :  { %3033 = sst [smem:[#allocation11_spill]] %s3017_s6 }
   0x8   :  { %3034 = sst [smem:[#allocation12_spill]] %s3018_s7 }
   0x9   :  { %s2432_s29 = smov 0   ;;  %s2434_s30 = smov 0  }
   0xa   :  { %s2436_s15 = smov 0  }
   0xb LB: > { %s2445_s16 = sadd.s32 4294967295, %s2258_s15   ;;  %s2447_s17 = sadd.s32 1, %s2258_s15   ;;  %s2258_s15 = sphi %s2436_s15, %s3062_s15   ;;  %s2254_s30 = sphi %s2434_s30, %s3061_s30   ;;  %s2250_s29 = sphi %s2432_s29, %s3060_s29  }
   0xc   : > { %s291_s18 = ssub.s32 %s2258_s15, %s2447_s17  ;;  %s294_s19 = sadd.s32 1, %s2254_s30 }
   0xd   : > { %p292_p0 = scmp.eq.s32.totalorder %s291_s18, 0  ;;  %p304_p1 = scmp.ne.s32.totalorder %s2254_s30, %s2250_s29 }
   0xe   : > { %p305_p2 = scmp.eq.s32.totalorder %s2445_s16, 1  ;;  %p1825_p3 = scmp.ge.s32.totalorder %s2258_s15, 1 }
   0xf   : > { %s2455_s20 = scalar_select %p292_p0, %s2254_s30, %s294_s19  }
  0x10   : > { %p2457_p4 = por %p305_p2, %p304_p1  ;;  %p429_p5 = scmp.lt.s32.totalorder %s2258_s15, 3 }
  0x12   : > { %p430_p6 = pnand %p1825_p3, %p429_p5 }
  0x13   : > { %s2462_s22 = sshll.u32 (!%p430_p6), %s2445_s16, 4  ;;  %s3036_s0 = sld [smem:[#allocation5_spill]] (!%p430_p6) }
  0x14   : > { %433 = sbr.rel (%p430_p6) target bundleno = 1139 (0x473), region = 68  ;;  %p488_p7 = scmp.lt.s32.totalorder (!%p430_p6), %s2462_s22, 31 }
  0x15   : > { %s3037_s3 = sld [smem:[#allocation8_spill]] (!%p430_p6) }
  0x16   : > { %s3038_s2 = sld [smem:[#allocation7_spill]] (!%p430_p6) }
  0x17   : > { %s3040_s1 = sld [smem:[#allocation6_spill]] (!%p430_p6) }
  0x18   : > { %s3041_s7 = sld [smem:[#allocation12_spill]] (!%p430_p6) }
  0x19   : > { %s2466_s23 = scalar_select %p488_p7, %s2462_s22, 31  ;;  %vm606_vm0 = vcmask 130048   ;;  %v2356_v9 = vmov 0   ;;  %v773_v16 = vld [vmem:[%s3020_s9 + $0x18] sm:$0xff]  ;;  %v771_v20 = vld [vmem:[%s3020_s9 + $0x8] sm:$0xff]  ;;  %v842_v24 = vld [vmem:[%s3022_s11] sm:$0xff] }
  0x1a   : > { %2136 = vset.pattern.permute.xlu1 %v2356_v9  ;;  %2135 = vset.pattern.permute.xlu0 %v2356_v9  ;;  %s3042_s5 = sld [smem:[#allocation10_spill]]  ;;  %v772_v40 = vld [vmem:[%s3020_s9 + $0x10] sm:$0xff]  ;;  %v770_v48 = vld [vmem:[%s3020_s9] sm:$0xff]  ;;  %vm707_vm1 = vcmask 261120   ;;  %v843_v57 = vld [vmem:[%s3022_s11 + $0x8] sm:$0xff]  ;;  %vm794_vm2 = vcmask 64512  }
  0x1b   : > { %s3026_s24 = sshll.u32 %s2466_s23, 3  ;;  %2137 = vset.pattern.permute.xlu2 %v2356_v9  ;;  %v583_v10 = vld [vmem:[%s3037_s3 + $0x8] sm:$0xff]  ;;  %v582_v13 = vld [vmem:[%s3037_s3] sm:$0xff]  ;;  %v585_v17 = vld [vmem:[%s3037_s3 + $0x18] sm:$0xff]  ;;  %s3039_s26 = sshll.u32 %s2466_s23, 3  ;;  %vm963_vm3 = vcmask 39936  }
  0x1c   : > { %s2474_s27 = scalar_lea.vmem %s3036_s0, %s3026_s24  ;;  %593 = vperm.xlu1 %2136, %v583_v10   ;;  %603 = vperm.xlu0 %2135, %v585_v17   ;;  %v584_v21 = vld [vmem:[%s3037_s3 + $0x10] sm:$0xff]  ;;  %v578_v23 = vld [vmem:[%s3038_s2] sm:$0xff]  ;;  %v579_v25 = vld [vmem:[%s3038_s2 + $0x8] sm:$0xff]  ;;  %s3043_s4 = sld [smem:[#allocation9_spill]] }
  0x1d   : > { %v529_v0 = vld [vmem:[%s2474_s27 + $0x78] sm:$0xff]  ;;  %v528_v1 = vld [vmem:[%s2474_s27 + $0x70] sm:$0xff]  ;;  %v527_v2 = vld [vmem:[%s2474_s27 + $0x68] sm:$0xff]  ;;  %s2550_s0 = scalar_lea.vmem %s3040_s1, %s3039_s26  ;;  %s3044_s6 = sld [smem:[#allocation11_spill]] }
  0x1e   : > { %1833 = vmatpush.xpose.msk.msra.mxu0 %vm606_vm0, %v529_v0  ;;  %v526_v3 = vld [vmem:[%s2474_s27 + $0x60] sm:$0xff]  ;;  %v525_v4 = vld [vmem:[%s2474_s27 + $0x58] sm:$0xff]  ;;  %v524_v5 = vld [vmem:[%s2474_s27 + $0x50] sm:$0xff]  ;;  %s1044_s23 = ssub.s32 (%p2457_p4), 25, %s2462_s22 }
  0x1f   : > { %v523_v6 = vld [vmem:[%s2474_s27 + $0x48] sm:$0xff]  ;;  %v522_v7 = vld [vmem:[%s2474_s27 + $0x40] sm:$0xff]  ;;  %v521_v8 = vld [vmem:[%s2474_s27 + $0x38] sm:$0xff]  ;;  %p1045_p8 = scmp.lt.s32.totalorder (%p2457_p4), %s1044_s23, 16 }
  0x20   : > { %v520_v11 = vld [vmem:[%s2474_s27 + $0x30] sm:$0xff]  ;;  %v519_v12 = vld [vmem:[%s2474_s27 + $0x28] sm:$0xff]  ;;  %v518_v14 = vld [vmem:[%s2474_s27 + $0x20] sm:$0xff] }
  0x21   : > { %v517_v15 = vld [vmem:[%s2474_s27 + $0x18] sm:$0xff]  ;;  %v516_v18 = vld [vmem:[%s2474_s27 + $0x10] sm:$0xff]  ;;  %v515_v19 = vld [vmem:[%s2474_s27 + $0x8] sm:$0xff] }
  0x22   : > { %1834 = vmatpush.xpose.msk.msra.mxu0 %vm606_vm0, %v528_v1  ;;  %v514_v22 = vld [vmem:[%s2474_s27] sm:$0xff]  ;;  %v580_v26 = vld [vmem:[%s3038_s2 + $0x10] sm:$0xff]  ;;  %v581_v27 = vld [vmem:[%s3038_s2 + $0x18] sm:$0xff]  ;;  %s1908_s27 = sshll.u32 (%p2457_p4), %s2445_s16, 7 }
  0x23   : > { %v530_v28 = vld [vmem:[%s2550_s0] sm:$0xff]  ;;  %v531_v29 = vld [vmem:[%s2550_s0 + $0x8] sm:$0xff]  ;;  %v532_v30 = vld [vmem:[%s2550_s0 + $0x10] sm:$0xff]  ;;  %s2726_s25 = scalar_lea.vmem (%p2457_p4), %s3023_s12, %s1908_s27  }
  0x24   : > { %588 = vperm.xlu1 %2136, %v582_v13   ;;  %598 = vperm.xlu0 %2135, %v584_v21   ;;  %v732_v32 = vld [vmem:[%s3041_s7] sm:$0xff]  ;;  %v533_v33 = vld [vmem:[%s2550_s0 + $0x18] sm:$0xff]  ;;  %v535_v41 = vld [vmem:[%s2550_s0 + $0x28] sm:$0xff] }
  0x25   : > { %735 = vperm.xlu2 %2137, %v732_v32   ;;  %v701_v35 = vld [vmem:[%s3042_s5] sm:$0xff]  ;;  %v536_v52 = vld [vmem:[%s2550_s0 + $0x30] sm:$0xff]  ;;  %v537_v58 = vld [vmem:[%s2550_s0 + $0x38] sm:$0xff] }
  0x26   : > { %1835 = vmatpush.xpose.msk.msra.mxu0 %vm606_vm0, %v527_v2  ;;  %v534_v37 = vld [vmem:[%s2550_s0 + $0x20] sm:$0xff]  ;;  %v539_v60 = vld [vmem:[%s2550_s0 + $0x48] sm:$0xff]  ;;  %v540_v61 = vld [vmem:[%s2550_s0 + $0x50] sm:$0xff] }
  0x27   : > { %v700_v55 = vld [vmem:[%s3043_s4] sm:$0xff]  ;;  %v541_v62 = vld [vmem:[%s2550_s0 + $0x58] sm:$0xff]  ;;  %v543_v0 = vld [vmem:[%s2550_s0 + $0x68] sm:$0xff] }
  0x28   : > { %v731_v56 = vld [vmem:[%s3044_s6] sm:$0xff]  ;;  %v544_v1 = vld [vmem:[%s2550_s0 + $0x70] sm:$0xff]  ;;  %v545_v2 = vld [vmem:[%s2550_s0 + $0x78] sm:$0xff] }
  0x29   : > { %v538_v59 = vld [vmem:[%s2550_s0 + $0x40] sm:$0xff]  ;;  %v768_v17 = vld [vmem:[%s3019_s8 + $0x10] sm:$0xff] }
  0x2a   : > { %1836 = vmatpush.xpose.msk.msra.mxu0 %vm606_vm0, %v526_v3  ;;  %v542_v63 = vld [vmem:[%s2550_s0 + $0x60] sm:$0xff]  ;;  %s472_s0 = sand.u32 1, %s2250_s29  }
  0x2b   : > { %s2612_s28 = sshll.u32 %s472_s0, 7 }
  0x2c   : > { %791 = vperm.xlu1 %2136, %v773_v16   ;;  %v767_v16 = vld [vmem:[%s3019_s8 + $0x8] sm:$0xff]  ;;  %s2615_s15 = scalar_lea.vmem [#allocation3], %s2612_s28   ;;  %s2650_s29 = scalar_lea.vmem [#allocation4], %s2612_s28  }
  0x2d   : > { %704 = vperm.xlu2 %2137, %v701_v35   ;;  %v840_v35 = vld [vmem:[%s3021_s10] sm:$0xff]  ;;  %s2663_s24 = scalar_lea.vmem [#allocation2], %s2612_s28  }
  0x2e   : > { %1837 = vmatpush.xpose.msk.msra.mxu0 %vm606_vm0, %v525_v4 }
  0x32   : > { %1838 = vmatpush.xpose.msk.msra.mxu0 %vm606_vm0, %v524_v5 }
  0x34   : > { %781 = vperm.xlu1 %2136, %v771_v20  }
  0x35   : > { %786 = vperm.xlu2 %2137, %v772_v40  }
  0x36   : > { %1839 = vmatpush.xpose.msk.msra.mxu0 %vm606_vm0, %v523_v6 }
  0x3a   : > { %1840 = vmatpush.xpose.msk.msra.mxu0 %vm606_vm0, %v522_v7 }
  0x3c   : > { %846 = vperm.xlu1 %2136, %v842_v24  }
  0x3d   : > { %776 = vperm.xlu2 %2137, %v770_v48  }
  0x3e   : > { %1841 = vmatpush.xpose.msk.msra.mxu0 %vm606_vm0, %v521_v8 }
  0x42   : > { %1842 = vmatpush.xpose.msk.msra.mxu0 %vm606_vm0, %v520_v11 }
  0x45   : > { %851 = vperm.xlu2 %2137, %v843_v57  }
  0x46   : > { %1843 = vmatpush.xpose.msk.msra.mxu0 %vm606_vm0, %v519_v12  ;;  %546 = vxpose.xlu0.b32.start [1/16] (narrow) %v530_v28, 8 }
  0x4a   : > { %1844 = vmatpush.xpose.msk.msra.mxu0 %vm606_vm0, %v518_v14 }
  0x4e   : > { %1845 = vmatpush.xpose.msk.msra.mxu0 %vm606_vm0, %v517_v15  ;;  %547 = vxpose.xlu0.b32.cont [2/16] (narrow) %v531_v29, 8  ;;  %v766_v15 = vld [vmem:[%s3019_s8] sm:$0xff] }
  0x52   : > { %1846 = vmatpush.xpose.msk.msra.mxu0 %vm606_vm0, %v516_v18  ;;  %v769_v18 = vld [vmem:[%s3019_s8 + $0x18] sm:$0xff] }
  0x56   : > { %1847 = vmatpush.xpose.msk.msra.mxu0 %vm606_vm0, %v515_v19  ;;  %548 = vxpose.xlu0.b32.cont [3/16] (narrow) %v532_v30, 8 }
  0x5a   : > { %1848 = vmatpush.xpose.msk.msra.mxu0 %vm606_vm0, %v514_v22 }
  0x5d   : > { %1849 = vmatmul.msk.f32.vlgmr.msra.gmra.mxu0 %vm606_vm0, %v578_v23 }
  0x5e   : > { %549 = vxpose.xlu0.b32.cont [4/16] (narrow) %v533_v33, 8 }
  0x65   : > { %1850 = vmatmul.msk.f32.gmra.mxu0 %vm606_vm0, %v579_v25 }
  0x66   : > { %550 = vxpose.xlu0.b32.cont [5/16] (narrow) %v534_v37, 8 }
  0x6d   : > { %1851 = vmatmul.msk.f32.gmra.mxu0 %vm606_vm0, %v580_v26 }
  0x6e   : > { %551 = vxpose.xlu0.b32.cont [6/16] (narrow) %v535_v41, 8 }
  0x75   : > { %1852 = vmatmul.msk.f32.gmra.mxu0 %vm606_vm0, %v581_v27 }
  0x76   : > { %552 = vxpose.xlu0.b32.cont [7/16] (narrow) %v536_v52, 8 }
  0x7e   : > { %553 = vxpose.xlu0.b32.cont [8/16] (narrow) %v537_v58, 8 }
  0x7f   : > { %v736_v3 = vpop.permute.xlu2 %735 }
  0x86   : > { %554 = vxpose.xlu0.b32.cont [9/16] (narrow) %v538_v59, 8 }
  0x87   : > { %v705_v4 = vpop.permute.xlu2 %704 }
  0x8e   : > { %v604_v36 = vpop.permute.xlu0 %603  ;;  %v594_v39 = vpop.permute.xlu1 %593  ;;  %555 = vxpose.xlu0.b32.cont [10/16] (narrow) %v539_v60, 8 }
  0x8f   : > { %v787_v23 = vpop.permute.xlu2 %786 }
  0x96   : > { %v599_v42 = vpop.permute.xlu0 %598  ;;  %v589_v49 = vpop.permute.xlu1 %588  ;;  %556 = vxpose.xlu0.b32.cont [11/16] (narrow) %v540_v61, 8 }
  0x97   : > { %v777_v30 = vpop.permute.xlu2 %776 }
  0x9e   : > { %557 = vxpose.xlu0.b32.cont [12/16] (narrow) %v541_v62, 8  ;;  %v792_v21 = vpop.permute.xlu1 %791 }
  0x9f   : > { %v852_v37 = vpop.permute.xlu2 %851 }
  0xa6   : > { %558 = vxpose.xlu0.b32.cont [13/16] (narrow) %v542_v63, 8  ;;  %v782_v27 = vpop.permute.xlu1 %781 }
  0xae   : > { %559 = vxpose.xlu0.b32.cont [14/16] (narrow) %v543_v0, 8  ;;  %v847_v41 = vpop.permute.xlu1 %846 }
  0xb6   : > { %560 = vxpose.xlu0.b32.cont [15/16] (narrow) %v544_v1, 8 }
  0xbe   : > { %561 = vxpose.xlu0.b32.end [16/16] (narrow) %v545_v2, 8 }
  0xda   : > { %v684_v31 = vpop.f32.mrf.mxu0 }
  0xdb   : > { %v685_v50 = vadd.f32 %v684_v31, %v589_v49 }
  0xdd   : > { %v696_v54 = vmax.f32 %v685_v50, 0.0 }
  0xe2   : > { %v687_v34 = vpop.f32.mrf.mxu0 }
  0xe3   : > { %v688_v46 = vadd.f32 %v687_v34, %v594_v39 }
  0xe5   : > { %v697_v53 = vmax.f32 %v688_v46, 0.0 }
  0xea   : > { %v690_v38 = vpop.f32.mrf.mxu0  ;;  %v562_v11 = vpop.trf.xlu0 }
  0xeb   : > { %v691_v44 = vadd.f32 %v690_v38, %v599_v42 }
  0xed   : > { %v698_v51 = vmax.f32 %v691_v44, 0.0 }
  0xf2   : > { %v693_v43 = vpop.f32.mrf.mxu0 }
  0xf3   : > { %v694_v45 = vadd.f32 %v693_v43, %v604_v36  ;;  %v841_v36 = vld [vmem:[%s3021_s10 + $0x8] sm:$0xff] }
  0xf5   : > { %v699_v47 = vmax.f32 %v694_v45, 0.0 }
  0xf7   : > { %723 = vmatpush.msra.mxu1 %v699_v47  ;;  %753 = vmatpush.msra.mxu2 %v699_v47 }
  0xf9   : > { %724 = vmatpush.msra.mxu1 %v698_v51  ;;  %754 = vmatpush.msra.mxu2 %v698_v51 }
  0xfb   : > { %725 = vmatpush.msra.mxu1 %v697_v53  ;;  %755 = vmatpush.msra.mxu2 %v697_v53 }
  0xfd   : > { %726 = vmatpush.msra.mxu1 %v696_v54  ;;  %756 = vmatpush.msra.mxu2 %v696_v54 }
  0xfe   : > { %1853 = vmatmul.msk.f32.vlgmr.msra.gmra.mxu1 %vm707_vm1, %v700_v55  ;;  %1854 = vmatmul.msk.f32.vlgmr.msra.gmra.mxu2 %vm707_vm1, %v731_v56 }
 0x17b   : > { %v728_v5 = vpop.f32.mrf.mxu1 }
 0x17c   : > { %v729_v6 = vadd.f32 %v728_v5, %v705_v4 }
 0x17e   : > { %931 = vxpose.xlu2.b32.start.end [1/1] (short) %v729_v6, 128 }
 0x181   : > { %v758_v7 = vpop.f32.mrf.mxu2 }
 0x182   : > { %v759_v8 = vadd.f32 %v758_v7, %v736_v3 }
 0x184   : > { %v761_v9 = vmul.f32 0.5, %v759_v8 }
 0x186   : > { %v762_v10 = vmul.f32 1.442695, %v761_v9 }
 0x188   : > { %2138 = vpow2.f32 %v762_v10 }
 0x18e   : > { %v2139_v12 = vpop.eup %2138 }
 0x18f   : > { %v764_v13 = vmul.f32 %v2139_v12, %v562_v11 }
 0x191   : > { %v765_v14 = vadd.f32 %v764_v13, %v729_v6 }
 0x193   : > { %822 = vmatpush.msra.mxu3 %v765_v14 }
 0x194   : > { %1855 = vmatmul.msk.f32.vlgmr.msra.gmra.mxu3 %vm794_vm2, %v766_v15 }
 0x19c   : > { %1856 = vmatmul.msk.f32.gmra.mxu3 %vm794_vm2, %v767_v16 }
 0x1a4   : > { %1857 = vmatmul.msk.f32.gmra.mxu3 %vm794_vm2, %v768_v17 }
 0x1ac   : > { %1858 = vmatmul.msk.f32.gmra.mxu3 %vm794_vm2, %v769_v18 }
 0x1fe   : > { %980 = vxpose.xlu2.b32.start.end [1/1] (short) %v759_v8, 128 }
 0x217   : > { %v824_v19 = vpop.f32.mrf.mxu3  ;;  %v947_v38 = vpop.trf.xlu2 }
 0x218   : > { %v825_v31 = vadd.f32 %v824_v19, %v777_v30  ;;  %964 = vst.msk [vmem:[%s2615_s15] sm:$0xff] %vm963_vm3, %v947_v38 }
 0x21a   : > { %v836_v34 = vmax.f32 %v825_v31, 0.0 }
 0x21f   : > { %v827_v20 = vpop.f32.mrf.mxu3  ;;  %v948_v39 = vpop.trf.xlu2 }
 0x220   : > { %v828_v28 = vadd.f32 %v827_v20, %v782_v27  ;;  %965 = vst.msk [vmem:[%s2615_s15 + $0x8] sm:$0xff] %vm963_vm3, %v948_v39 }
 0x222   : > { %v837_v33 = vmax.f32 %v828_v28, 0.0 }
 0x227   : > { %v830_v22 = vpop.f32.mrf.mxu3  ;;  %v949_v40 = vpop.trf.xlu2 }
 0x228   : > { %v831_v25 = vadd.f32 %v830_v22, %v787_v23  ;;  %966 = vst.msk [vmem:[%s2615_s15 + $0x10] sm:$0xff] %vm963_vm3, %v949_v40 }
 0x22a   : > { %v838_v32 = vmax.f32 %v831_v25, 0.0 }
 0x22f   : > { %v833_v24 = vpop.f32.mrf.mxu3  ;;  %v950_v44 = vpop.trf.xlu2 }
 0x230   : > { %v834_v26 = vadd.f32 %v833_v24, %v792_v21  ;;  %967 = vst.msk [vmem:[%s2615_s15 + $0x18] sm:$0xff] %vm963_vm3, %v950_v44 }
 0x232   : > { %v839_v29 = vmax.f32 %v834_v26, 0.0 }
 0x234   : > { %872 = vmatpush.msrb.mxu1 %v839_v29 }
 0x236   : > { %873 = vmatpush.msrb.mxu1 %v838_v32 }
 0x237   : > { %v951_v47 = vpop.trf.xlu2 }
 0x238   : > { %874 = vmatpush.msrb.mxu1 %v837_v33  ;;  %968 = vst.msk [vmem:[%s2615_s15 + $0x20] sm:$0xff] %vm963_vm3, %v951_v47 }
 0x23a   : > { %875 = vmatpush.msrb.mxu1 %v836_v34 }
 0x23b   : > { %1859 = vmatmul.msk.f32.vlgmr.msrb.gmra.mxu1 %vm707_vm1, %v840_v35 }
 0x23f   : > { %v952_v48 = vpop.trf.xlu2 }
 0x240   : > { %969 = vst.msk [vmem:[%s2615_s15 + $0x28] sm:$0xff] %vm963_vm3, %v952_v48 }
 0x243   : > { %1860 = vmatmul.msk.f32.gmra.mxu1 %vm707_vm1, %v841_v36 }
 0x247   : > { %v953_v49 = vpop.trf.xlu2 }
 0x248   : > { %970 = vst.msk [vmem:[%s2615_s15 + $0x30] sm:$0xff] %vm963_vm3, %v953_v49 }
 0x24f   : > { %v954_v50 = vpop.trf.xlu2 }
 0x250   : > { %971 = vst.msk [vmem:[%s2615_s15 + $0x38] sm:$0xff] %vm963_vm3, %v954_v50 }
 0x257   : > { %v955_v51 = vpop.trf.xlu2 }
 0x258   : > { %972 = vst.msk [vmem:[%s2615_s15 + $0x40] sm:$0xff] %vm963_vm3, %v955_v51 }
 0x25f   : > { %v956_v52 = vpop.trf.xlu2 }
 0x260   : > { %973 = vst.msk [vmem:[%s2615_s15 + $0x48] sm:$0xff] %vm963_vm3, %v956_v52 }
 0x267   : > { %v957_v53 = vpop.trf.xlu2 }
 0x268   : > { %974 = vst.msk [vmem:[%s2615_s15 + $0x50] sm:$0xff] %vm963_vm3, %v957_v53 }
 0x26f   : > { %v958_v54 = vpop.trf.xlu2 }
 0x270   : > { %975 = vst.msk [vmem:[%s2615_s15 + $0x58] sm:$0xff] %vm963_vm3, %v958_v54 }
 0x277   : > { %v959_v55 = vpop.trf.xlu2 }
 0x278   : > { %976 = vst.msk [vmem:[%s2615_s15 + $0x60] sm:$0xff] %vm963_vm3, %v959_v55 }
 0x27f   : > { %v960_v56 = vpop.trf.xlu2 }
 0x280   : > { %977 = vst.msk [vmem:[%s2615_s15 + $0x68] sm:$0xff] %vm963_vm3, %v960_v56 }
 0x287   : > { %v961_v57 = vpop.trf.xlu2 }
 0x288   : > { %978 = vst.msk [vmem:[%s2615_s15 + $0x70] sm:$0xff] %vm963_vm3, %v961_v57 }
 0x28f   : > { %v962_v58 = vpop.trf.xlu2 }
 0x290   : > { %979 = vst.msk [vmem:[%s2615_s15 + $0x78] sm:$0xff] %vm963_vm3, %v962_v58 }
 0x297   : > { %v996_v59 = vpop.trf.xlu2 }
 0x298   : > { %1012 = vst.msk [vmem:[%s2650_s29] sm:$0xff] %vm963_vm3, %v996_v59 }
 0x29f   : > { %v997_v60 = vpop.trf.xlu2 }
 0x2a0   : > { %1013 = vst.msk [vmem:[%s2650_s29 + $0x8] sm:$0xff] %vm963_vm3, %v997_v60 }
 0x2a7   : > { %v998_v61 = vpop.trf.xlu2 }
 0x2a8   : > { %1014 = vst.msk [vmem:[%s2650_s29 + $0x10] sm:$0xff] %vm963_vm3, %v998_v61 }
 0x2af   : > { %v999_v62 = vpop.trf.xlu2 }
 0x2b0   : > { %1015 = vst.msk [vmem:[%s2650_s29 + $0x18] sm:$0xff] %vm963_vm3, %v999_v62 }
 0x2b7   : > { %v1000_v63 = vpop.trf.xlu2 }
 0x2b8   : > { %v877_v42 = vpop.f32.mrf.mxu1  ;;  %1016 = vst.msk [vmem:[%s2650_s29 + $0x20] sm:$0xff] %vm963_vm3, %v1000_v63 }
 0x2b9   : > { %v878_v43 = vadd.f32 %v877_v42, %v847_v41 }
 0x2bb   : > { %883 = vxpose.xlu1.b32.start [1/2] (short) %v878_v43, 128 }
 0x2bf   : > { %v1001_v1 = vpop.trf.xlu2 }
 0x2c0   : > { %v880_v45 = vpop.f32.mrf.mxu1  ;;  %1017 = vst.msk [vmem:[%s2650_s29 + $0x28] sm:$0xff] %vm963_vm3, %v1001_v1 }
 0x2c1   : > { %v881_v46 = vadd.f32 %v880_v45, %v852_v37 }
 0x2c3   : > { %884 = vxpose.xlu1.b32.end [2/2] (short) %v881_v46, 128 }
 0x2c7   : > { %v1002_v3 = vpop.trf.xlu2 }
 0x2c8   : > { %1018 = vst.msk [vmem:[%s2650_s29 + $0x30] sm:$0xff] %vm963_vm3, %v1002_v3 }
 0x2cf   : > { %v1003_v5 = vpop.trf.xlu2 }
 0x2d0   : > { %1019 = vst.msk [vmem:[%s2650_s29 + $0x38] sm:$0xff] %vm963_vm3, %v1003_v5 }
 0x2d7   : > { %v1004_v7 = vpop.trf.xlu2 }
 0x2d8   : > { %1020 = vst.msk [vmem:[%s2650_s29 + $0x40] sm:$0xff] %vm963_vm3, %v1004_v7 }
 0x2df   : > { %v1005_v9 = vpop.trf.xlu2 }
 0x2e0   : > { %1021 = vst.msk [vmem:[%s2650_s29 + $0x48] sm:$0xff] %vm963_vm3, %v1005_v9 }
 0x2e7   : > { %v1006_v11 = vpop.trf.xlu2 }
 0x2e8   : > { %1022 = vst.msk [vmem:[%s2650_s29 + $0x50] sm:$0xff] %vm963_vm3, %v1006_v11 }
 0x2ef   : > { %v1007_v13 = vpop.trf.xlu2 }
 0x2f0   : > { %1023 = vst.msk [vmem:[%s2650_s29 + $0x58] sm:$0xff] %vm963_vm3, %v1007_v13 }
 0x2f7   : > { %v1008_v15 = vpop.trf.xlu2 }
 0x2f8   : > { %1024 = vst.msk [vmem:[%s2650_s29 + $0x60] sm:$0xff] %vm963_vm3, %v1008_v15 }
 0x2ff   : > { %v1009_v17 = vpop.trf.xlu2 }
 0x300   : > { %1025 = vst.msk [vmem:[%s2650_s29 + $0x68] sm:$0xff] %vm963_vm3, %v1009_v17 }
 0x307   : > { %v1010_v19 = vpop.trf.xlu2 }
 0x308   : > { %1026 = vst.msk [vmem:[%s2650_s29 + $0x70] sm:$0xff] %vm963_vm3, %v1010_v19 }
 0x30f   : > { %v1011_v21 = vpop.trf.xlu2 }
 0x310   : > { %1027 = vst.msk [vmem:[%s2650_s29 + $0x78] sm:$0xff] %vm963_vm3, %v1011_v21 }
 0x35f   : > { %v899_v0 = vpop.trf.xlu1 }
 0x360   : > { %915 = vst.msk [vmem:[%s2663_s24] sm:$0xff] %vm606_vm0, %v899_v0 }
 0x367   : > { %v900_v2 = vpop.trf.xlu1 }
 0x368   : > { %916 = vst.msk [vmem:[%s2663_s24 + $0x8] sm:$0xff] %vm606_vm0, %v900_v2 }
 0x36f   : > { %v901_v4 = vpop.trf.xlu1 }
 0x370   : > { %917 = vst.msk [vmem:[%s2663_s24 + $0x10] sm:$0xff] %vm606_vm0, %v901_v4 }
 0x377   : > { %v902_v6 = vpop.trf.xlu1 }
 0x378   : > { %918 = vst.msk [vmem:[%s2663_s24 + $0x18] sm:$0xff] %vm606_vm0, %v902_v6 }
 0x37f   : > { %v903_v8 = vpop.trf.xlu1 }
 0x380   : > { %919 = vst.msk [vmem:[%s2663_s24 + $0x20] sm:$0xff] %vm606_vm0, %v903_v8 }
 0x387   : > { %v904_v10 = vpop.trf.xlu1 }
 0x388   : > { %920 = vst.msk [vmem:[%s2663_s24 + $0x28] sm:$0xff] %vm606_vm0, %v904_v10 }
 0x38f   : > { %v905_v12 = vpop.trf.xlu1 }
 0x390   : > { %921 = vst.msk [vmem:[%s2663_s24 + $0x30] sm:$0xff] %vm606_vm0, %v905_v12 }
 0x397   : > { %v906_v14 = vpop.trf.xlu1 }
 0x398   : > { %922 = vst.msk [vmem:[%s2663_s24 + $0x38] sm:$0xff] %vm606_vm0, %v906_v14 }
 0x39f   : > { %v907_v16 = vpop.trf.xlu1 }
 0x3a0   : > { %923 = vst.msk [vmem:[%s2663_s24 + $0x40] sm:$0xff] %vm606_vm0, %v907_v16 }
 0x3a7   : > { %v908_v18 = vpop.trf.xlu1 }
 0x3a8   : > { %924 = vst.msk [vmem:[%s2663_s24 + $0x48] sm:$0xff] %vm606_vm0, %v908_v18 }
 0x3af   : > { %v909_v20 = vpop.trf.xlu1 }
 0x3b0   : > { %925 = vst.msk [vmem:[%s2663_s24 + $0x50] sm:$0xff] %vm606_vm0, %v909_v20 }
 0x3b7   : > { %v910_v22 = vpop.trf.xlu1 }
 0x3b8   : > { %926 = vst.msk [vmem:[%s2663_s24 + $0x58] sm:$0xff] %vm606_vm0, %v910_v22 }
 0x3bf   : > { %v911_v23 = vpop.trf.xlu1 }
 0x3c0   : > { %927 = vst.msk [vmem:[%s2663_s24 + $0x60] sm:$0xff] %vm606_vm0, %v911_v23 }
 0x3c7   : > { %v912_v24 = vpop.trf.xlu1 }
 0x3c8   : > { %928 = vst.msk [vmem:[%s2663_s24 + $0x68] sm:$0xff] %vm606_vm0, %v912_v24 }
 0x3cf   : > { %v913_v25 = vpop.trf.xlu1 }
 0x3d0   : > { %929 = vst.msk [vmem:[%s2663_s24 + $0x70] sm:$0xff] %vm606_vm0, %v913_v25 }
 0x3d4   : > { %1042 = sbr.rel (!%p2457_p4) target bundleno = 1033 (0x409), region = 72 }
 0x3d7   : > { %v914_v26 = vpop.trf.xlu1 }
 0x3d8   : > { %930 = vst.msk [vmem:[%s2663_s24 + $0x78] sm:$0xff] %vm606_vm0, %v914_v26 }
 0x3d9   : > { %s3064_s23 = smov (!%p1045_p8, %s1044_s23), 16 }
 0x3da   : > { %s1865_s26 = sshll.u32 %s3064_s23, 3 }
 0x3db   : > { %p1868_p9 = scmp.eq.s32.totalorder %s1865_s26, 0 }
 0x3dc   : > { %s2732_s0 = sshrl.u32 (!%p1868_p9), %s3064_s23, 4 }
 0x3dd   : > { %1053 = sbr.rel (%p1868_p9) target bundleno = 1033 (0x409), region = 76  ;;  %p1869_p10 = scmp.le.s32.totalorder (!%p1868_p9), %s2732_s0, 0 }
 0x3e2   : > { %1698 = sbr.rel (%p1869_p10) target bundleno = 1016 (0x3f8), region = 299  ;;  %s3045_s28 = smov (!%p1869_p10), %s2726_s25 }
 0x3e3   : > { %s3046_s18 = smov (!%p1869_p10), %s2663_s24  ;;  %s2741_s27 = smov (!%p1869_p10), 0  }
 0x3e4   : > { %s2743_s19 = smov (!%p1869_p10), 0  }
 0x3e7 LB: >> { %v1146_v27 = vld [vmem:[%s2266_s18] sm:$0xff]  ;;  %v1148_v28 = vld [vmem:[%s2266_s18 + $0x8] sm:$0xff]  ;;  %v1150_v29 = vld [vmem:[%s2266_s18 + $0x10] sm:$0xff]  ;;  %s1178_s26 = sadd.s32 1, %s2270_s27  ;;  %s1140_s19 = sadd.s32 1, %s2274_s19   ;;  %s2274_s19 = sphi %s2743_s19, %s1140_s19   ;;  %s2270_s27 = sphi %s2741_s27, %s3049_s27   ;;  %s2266_s18 = sphi %s3046_s18, %s3048_s18   ;;  %s2262_s28 = sphi %s3045_s28, %s3047_s28  }
 0x3e8   : >> { %1147 = vst [vmem:[%s2262_s28] sm:$0xff] %v1146_v27  ;;  %v1152_v30 = vld [vmem:[%s2266_s18 + $0x18] sm:$0xff]  ;;  %p1179_p11 = scmp.ge.s32.totalorder %s1178_s26, %s2732_s0  ;;  %v1154_v31 = vld [vmem:[%s2266_s18 + $0x20] sm:$0xff]  ;;  %v1156_v32 = vld [vmem:[%s2266_s18 + $0x28] sm:$0xff]  ;;  %p1139_p12 = scmp.ge.s32.totalorder %s1140_s19, %s2732_s0 }
 0x3e9   : >> { %1149 = vst [vmem:[%s2262_s28 + $0x8] sm:$0xff] %v1148_v28  ;;  %v1158_v33 = vld [vmem:[%s2266_s18 + $0x30] sm:$0xff]  ;;  %v1160_v34 = vld [vmem:[%s2266_s18 + $0x38] sm:$0xff]  ;;  %v1162_v35 = vld [vmem:[%s2266_s18 + $0x40] sm:$0xff] }
 0x3ea   : >> { %1151 = vst [vmem:[%s2262_s28 + $0x10] sm:$0xff] %v1150_v29  ;;  %s3066_s26 = smov (%p1179_p11, %s1178_s26), 0  ;;  %v1164_v36 = vld [vmem:[%s2266_s18 + $0x48] sm:$0xff]  ;;  %v1166_v37 = vld [vmem:[%s2266_s18 + $0x50] sm:$0xff]  ;;  %v1168_v38 = vld [vmem:[%s2266_s18 + $0x58] sm:$0xff] }
 0x3eb   : >> { %1153 = vst [vmem:[%s2262_s28 + $0x18] sm:$0xff] %v1152_v30  ;;  %s1870_s27 = sshll.u32 %s3066_s26, 7  ;;  %v1170_v39 = vld [vmem:[%s2266_s18 + $0x60] sm:$0xff]  ;;  %v1172_v40 = vld [vmem:[%s2266_s18 + $0x68] sm:$0xff]  ;;  %v1174_v41 = vld [vmem:[%s2266_s18 + $0x70] sm:$0xff] }
 0x3ec   : >> { %1155 = vst [vmem:[%s2262_s28 + $0x20] sm:$0xff] %v1154_v31  ;;  %s1183_s1 = scalar_lea.vmem %s2663_s24, %s1870_s27 [#allocation2]   ;;  %s1184_s2 = scalar_lea.vmem %s2726_s25, %s1870_s27   ;;  %v1176_v42 = vld [vmem:[%s2266_s18 + $0x78] sm:$0xff] }
 0x3ed   : >> { %1157 = vst [vmem:[%s2262_s28 + $0x28] sm:$0xff] %v1156_v32  ;;  %s3048_s18 = smov %s1183_s1  ;;  %s3049_s27 = smov %s3066_s26 }
 0x3ee   : >> { %1159 = vst [vmem:[%s2262_s28 + $0x30] sm:$0xff] %v1158_v33 }
 0x3ef   : >> { %1161 = vst [vmem:[%s2262_s28 + $0x38] sm:$0xff] %v1160_v34 }
 0x3f0   : >> { %1163 = vst [vmem:[%s2262_s28 + $0x40] sm:$0xff] %v1162_v35 }
 0x3f1   : >> { %1165 = vst [vmem:[%s2262_s28 + $0x48] sm:$0xff] %v1164_v36 }
 0x3f2   : >> { %1167 = vst [vmem:[%s2262_s28 + $0x50] sm:$0xff] %v1166_v37 }
 0x3f3   : >> { %1169 = vst [vmem:[%s2262_s28 + $0x58] sm:$0xff] %v1168_v38  ;;  %1142 = sbr.rel (!%p1139_p12) target bundleno = 999 (0x3e7), region = 305 }
 0x3f4   : >> { %1171 = vst [vmem:[%s2262_s28 + $0x60] sm:$0xff] %v1170_v39 }
 0x3f5   : >> { %1173 = vst [vmem:[%s2262_s28 + $0x68] sm:$0xff] %v1172_v40 }
 0x3f6   : >> { %1175 = vst [vmem:[%s2262_s28 + $0x70] sm:$0xff] %v1174_v41 }
 0x3f7   : >> { %1177 = vst [vmem:[%s2262_s28 + $0x78] sm:$0xff] %v1176_v42  ;;  %s3047_s28 = smov %s1184_s2 }
 0x3f8 PF: > { %s2805_s3 = sand.u32 15, %s3064_s23   ;;  %s1909_s4 = sshll.u32 %s2732_s0, 7 }
 0x3f9   : > { %s1189_s5 = scalar_lea.vmem %s2663_s24, %s1909_s4 [#allocation2]   ;;  %s1191_s6 = scalar_lea.vmem %s2726_s25, %s1909_s4  }
 0x3fa   : > { %p1875_p13 = scmp.le.s32.totalorder %s2805_s3, 0 }
 0x3fb   : > { %s2276_s2 = smov (!%p1875_p13), %s1191_s6   ;;  %s2280_s1 = smov (!%p1875_p13), %s1189_s5  }
 0x3fc   : > { %1712 = sbr.rel (%p1875_p13) target bundleno = 1033 (0x409), region = 310  ;;  %s2284_s7 = smov (!%p1875_p13), 0  }
 0x3fd   : > { %s2288_s26 = smov (!%p1875_p13), 0  }
 0x401 LB: >> { %v1201_v43 = vld [vmem:[%s2282_s1] sm:$0xff]  ;;  %s1203_s23 = sadd.s32 1, %s2286_s7  ;;  %s1195_s26 = sadd.s32 1, %s2290_s26   ;;  %s2290_s26 = sphi %s2288_s26, %s1195_s26   ;;  %s2286_s7 = sphi %s2284_s7, %s2285_s7   ;;  %s2282_s1 = sphi %s2280_s1, %s1208_s1   ;;  %s2278_s2 = sphi %s2276_s2, %s1209_s2  }
 0x402   : >> { %1202 = vst [vmem:[%s2278_s2] sm:$0xff] %v1201_v43  ;;  %p1204_p0 = scmp.ge.s32.totalorder %s1203_s23, %s2805_s3  ;;  %p1194_p1 = scmp.ge.s32.totalorder %s1195_s26, %s2805_s3 }
 0x404   : >> { %s3068_s23 = smov (%p1204_p0, %s1203_s23), 0  ;;  %1197 = sbr.rel (!%p1194_p1) target bundleno = 1025 (0x401), region = 316 }
 0x405   : >> { %s1876_s4 = sshll.u32 %s3068_s23, 3  ;;  %s2285_s7 = smov %s3068_s23  }
 0x406   : >> { %s1208_s1 = scalar_lea.vmem %s1189_s5, %s1876_s4 [#allocation2]   ;;  %s1209_s2 = scalar_lea.vmem %s1191_s6, %s1876_s4  }
 0x409 PF: > { %1215 = sbr.rel (!%p2457_p4) target bundleno = 1086 (0x43e), region = 124  ;;  %s1217_s7 = ssub.s32 (%p2457_p4), 25, %s2462_s22 }
 0x40a   : > { %s1911_s24 = sshll.u32 (%p2457_p4), %s2445_s16, 7  ;;  %p1218_p2 = scmp.lt.s32.totalorder (%p2457_p4), %s1217_s7, 16 }
 0x40b   : > { %s2820_s28 = scalar_lea.vmem (%p2457_p4), %s3024_s13, %s1911_s24  }
 0x40e   : > { %s3070_s7 = smov (!%p1218_p2, %s1217_s7), 16 }
 0x40f   : > { %s1879_s18 = sshll.u32 %s3070_s7, 3 }
 0x410   : > { %p1882_p3 = scmp.eq.s32.totalorder %s1879_s18, 0 }
 0x411   : > { %s2826_s3 = sshrl.u32 (!%p1882_p3), %s3070_s7, 4 }
 0x412   : > { %1226 = sbr.rel (%p1882_p3) target bundleno = 1086 (0x43e), region = 128  ;;  %p1883_p5 = scmp.le.s32.totalorder (!%p1882_p3), %s2826_s3, 0 }
 0x417   : > { %1726 = sbr.rel (%p1883_p5) target bundleno = 1069 (0x42d), region = 321  ;;  %s3050_s5 = smov (!%p1883_p5), %s2820_s28 }
 0x418   : > { %s3051_s6 = smov (!%p1883_p5), %s2615_s15  ;;  %s2835_s19 = smov (!%p1883_p5), 0  }
 0x419   : > { %s2837_s27 = smov (!%p1883_p5), 0  }
 0x41c LB: >> { %v1319_v44 = vld [vmem:[%s2298_s6] sm:$0xff]  ;;  %v1321_v45 = vld [vmem:[%s2298_s6 + $0x8] sm:$0xff]  ;;  %v1323_v46 = vld [vmem:[%s2298_s6 + $0x10] sm:$0xff]  ;;  %s1351_s2 = sadd.s32 1, %s2302_s19  ;;  %s1313_s27 = sadd.s32 1, %s2306_s27   ;;  %s2306_s27 = sphi %s2837_s27, %s1313_s27   ;;  %s2302_s19 = sphi %s2835_s19, %s3054_s19   ;;  %s2298_s6 = sphi %s3051_s6, %s3053_s6   ;;  %s2294_s5 = sphi %s3050_s5, %s3052_s5  }
 0x41d   : >> { %1320 = vst [vmem:[%s2294_s5] sm:$0xff] %v1319_v44  ;;  %v1325_v47 = vld [vmem:[%s2298_s6 + $0x18] sm:$0xff]  ;;  %p1352_p6 = scmp.ge.s32.totalorder %s1351_s2, %s2826_s3  ;;  %v1327_v48 = vld [vmem:[%s2298_s6 + $0x20] sm:$0xff]  ;;  %v1329_v49 = vld [vmem:[%s2298_s6 + $0x28] sm:$0xff]  ;;  %p1312_p7 = scmp.ge.s32.totalorder %s1313_s27, %s2826_s3 }
 0x41e   : >> { %1322 = vst [vmem:[%s2294_s5 + $0x8] sm:$0xff] %v1321_v45  ;;  %v1331_v50 = vld [vmem:[%s2298_s6 + $0x30] sm:$0xff]  ;;  %v1333_v51 = vld [vmem:[%s2298_s6 + $0x38] sm:$0xff]  ;;  %v1335_v52 = vld [vmem:[%s2298_s6 + $0x40] sm:$0xff] }
 0x41f   : >> { %1324 = vst [vmem:[%s2294_s5 + $0x10] sm:$0xff] %v1323_v46  ;;  %s3072_s2 = smov (%p1352_p6, %s1351_s2), 0  ;;  %v1337_v53 = vld [vmem:[%s2298_s6 + $0x48] sm:$0xff]  ;;  %v1339_v54 = vld [vmem:[%s2298_s6 + $0x50] sm:$0xff]  ;;  %v1341_v55 = vld [vmem:[%s2298_s6 + $0x58] sm:$0xff] }
 0x420   : >> { %1326 = vst [vmem:[%s2294_s5 + $0x18] sm:$0xff] %v1325_v47  ;;  %s1884_s1 = sshll.u32 %s3072_s2, 7  ;;  %v1343_v56 = vld [vmem:[%s2298_s6 + $0x60] sm:$0xff]  ;;  %v1345_v57 = vld [vmem:[%s2298_s6 + $0x68] sm:$0xff]  ;;  %v1347_v58 = vld [vmem:[%s2298_s6 + $0x70] sm:$0xff]  ;;  %s3054_s19 = smov %s3072_s2 }
 0x421   : >> { %1328 = vst [vmem:[%s2294_s5 + $0x20] sm:$0xff] %v1327_v48  ;;  %s1356_s26 = scalar_lea.vmem %s2615_s15, %s1884_s1 [#allocation3]   ;;  %s1357_s23 = scalar_lea.vmem %s2820_s28, %s1884_s1   ;;  %v1349_v59 = vld [vmem:[%s2298_s6 + $0x78] sm:$0xff] }
 0x422   : >> { %1330 = vst [vmem:[%s2294_s5 + $0x28] sm:$0xff] %v1329_v49  ;;  %s3053_s6 = smov %s1356_s26 }
 0x423   : >> { %1332 = vst [vmem:[%s2294_s5 + $0x30] sm:$0xff] %v1331_v50 }
 0x424   : >> { %1334 = vst [vmem:[%s2294_s5 + $0x38] sm:$0xff] %v1333_v51 }
 0x425   : >> { %1336 = vst [vmem:[%s2294_s5 + $0x40] sm:$0xff] %v1335_v52 }
 0x426   : >> { %1338 = vst [vmem:[%s2294_s5 + $0x48] sm:$0xff] %v1337_v53 }
 0x427   : >> { %1340 = vst [vmem:[%s2294_s5 + $0x50] sm:$0xff] %v1339_v54 }
 0x428   : >> { %1342 = vst [vmem:[%s2294_s5 + $0x58] sm:$0xff] %v1341_v55  ;;  %1315 = sbr.rel (!%p1312_p7) target bundleno = 1052 (0x41c), region = 327 }
 0x429   : >> { %1344 = vst [vmem:[%s2294_s5 + $0x60] sm:$0xff] %v1343_v56 }
 0x42a   : >> { %1346 = vst [vmem:[%s2294_s5 + $0x68] sm:$0xff] %v1345_v57 }
 0x42b   : >> { %1348 = vst [vmem:[%s2294_s5 + $0x70] sm:$0xff] %v1347_v58 }
 0x42c   : >> { %1350 = vst [vmem:[%s2294_s5 + $0x78] sm:$0xff] %v1349_v59  ;;  %s3052_s5 = smov %s1357_s23 }
 0x42d PF: > { %s2899_s4 = sand.u32 15, %s3070_s7   ;;  %s1912_s24 = sshll.u32 %s2826_s3, 7 }
 0x42e   : > { %s1362_s25 = scalar_lea.vmem %s2615_s15, %s1912_s24 [#allocation3]   ;;  %s1364_s0 = scalar_lea.vmem %s2820_s28, %s1912_s24  }
 0x42f   : > { %p1889_p8 = scmp.le.s32.totalorder %s2899_s4, 0 }
 0x430   : > { %s2308_s18 = smov (!%p1889_p8), %s1364_s0   ;;  %s2312_s1 = smov (!%p1889_p8), %s1362_s25  }
 0x431   : > { %1740 = sbr.rel (%p1889_p8) target bundleno = 1086 (0x43e), region = 332  ;;  %s2316_s26 = smov (!%p1889_p8), 0  }
 0x432   : > { %s2320_s2 = smov (!%p1889_p8), 0  }
 0x436 LB: >> { %v1374_v60 = vld [vmem:[%s2314_s1] sm:$0xff]  ;;  %s1376_s7 = sadd.s32 1, %s2318_s26  ;;  %s1368_s2 = sadd.s32 1, %s2322_s2   ;;  %s2322_s2 = sphi %s2320_s2, %s1368_s2   ;;  %s2318_s26 = sphi %s2316_s26, %s2317_s26   ;;  %s2314_s1 = sphi %s2312_s1, %s1381_s1   ;;  %s2310_s18 = sphi %s2308_s18, %s1382_s18  }
 0x437   : >> { %1375 = vst [vmem:[%s2310_s18] sm:$0xff] %v1374_v60  ;;  %p1377_p9 = scmp.ge.s32.totalorder %s1376_s7, %s2899_s4  ;;  %p1367_p10 = scmp.ge.s32.totalorder %s1368_s2, %s2899_s4 }
 0x439   : >> { %s3074_s7 = smov (%p1377_p9, %s1376_s7), 0  ;;  %1370 = sbr.rel (!%p1367_p10) target bundleno = 1078 (0x436), region = 338 }
 0x43a   : >> { %s1890_s15 = sshll.u32 %s3074_s7, 3  ;;  %s2317_s26 = smov %s3074_s7  }
 0x43b   : >> { %s1381_s1 = scalar_lea.vmem %s1362_s25, %s1890_s15 [#allocation3]   ;;  %s1382_s18 = scalar_lea.vmem %s1364_s0, %s1890_s15  }
 0x43e PF: > { %1388 = sbr.rel (!%p2457_p4) target bundleno = 1139 (0x473), region = 176  ;;  %s1390_s28 = ssub.s32 (%p2457_p4), 25, %s2462_s22 }
 0x43f   : > { %s1914_s3 = sshll.u32 (%p2457_p4), %s2445_s16, 7  ;;  %p1391_p11 = scmp.lt.s32.totalorder (%p2457_p4), %s1390_s28, 16 }
 0x440   : > { %s2914_s19 = scalar_lea.vmem (%p2457_p4), %s3025_s14, %s1914_s3  }
 0x443   : > { %s3076_s28 = smov (!%p1391_p11, %s1390_s28), 16 }
 0x444   : > { %s1893_s27 = sshll.u32 %s3076_s28, 3 }
 0x445   : > { %p1896_p12 = scmp.eq.s32.totalorder %s1893_s27, 0 }
 0x446   : > { %s2920_s23 = sshrl.u32 (!%p1896_p12), %s3076_s28, 4 }
 0x447   : > { %1399 = sbr.rel (%p1896_p12) target bundleno = 1139 (0x473), region = 180  ;;  %p1897_p4 = scmp.le.s32.totalorder (!%p1896_p12), %s2920_s23, 0 }
 0x44c   : > { %1754 = sbr.rel (%p1897_p4) target bundleno = 1122 (0x462), region = 343  ;;  %s3055_s16 = smov (!%p1897_p4), %s2914_s19 }
 0x44d   : > { %s3056_s21 = smov (!%p1897_p4), %s2650_s29  ;;  %s2929_s22 = smov (!%p1897_p4), 0  }
 0x44e   : > { %s2931_s4 = smov (!%p1897_p4), 0  }
 0x451 LB: >> { %v1492_v61 = vld [vmem:[%s2330_s21] sm:$0xff]  ;;  %v1494_v62 = vld [vmem:[%s2330_s21 + $0x8] sm:$0xff]  ;;  %v1496_v63 = vld [vmem:[%s2330_s21 + $0x10] sm:$0xff]  ;;  %s1524_s24 = sadd.s32 1, %s2334_s22  ;;  %s1486_s4 = sadd.s32 1, %s2338_s4   ;;  %s2338_s4 = sphi %s2931_s4, %s1486_s4   ;;  %s2334_s22 = sphi %s2929_s22, %s3059_s22   ;;  %s2330_s21 = sphi %s3056_s21, %s3058_s21   ;;  %s2326_s16 = sphi %s3055_s16, %s3057_s16  }
 0x452   : >> { %1493 = vst [vmem:[%s2326_s16] sm:$0xff] %v1492_v61  ;;  %v1498_v0 = vld [vmem:[%s2330_s21 + $0x18] sm:$0xff]  ;;  %p1525_p13 = scmp.ge.s32.totalorder %s1524_s24, %s2920_s23  ;;  %v1500_v1 = vld [vmem:[%s2330_s21 + $0x20] sm:$0xff]  ;;  %v1502_v2 = vld [vmem:[%s2330_s21 + $0x28] sm:$0xff]  ;;  %p1485_p0 = scmp.ge.s32.totalorder %s1486_s4, %s2920_s23 }
 0x453   : >> { %1495 = vst [vmem:[%s2326_s16 + $0x8] sm:$0xff] %v1494_v62  ;;  %v1504_v3 = vld [vmem:[%s2330_s21 + $0x30] sm:$0xff]  ;;  %v1506_v4 = vld [vmem:[%s2330_s21 + $0x38] sm:$0xff]  ;;  %v1508_v5 = vld [vmem:[%s2330_s21 + $0x40] sm:$0xff] }
 0x454   : >> { %1497 = vst [vmem:[%s2326_s16 + $0x10] sm:$0xff] %v1496_v63  ;;  %s3078_s24 = smov (%p1525_p13, %s1524_s24), 0  ;;  %v1510_v6 = vld [vmem:[%s2330_s21 + $0x48] sm:$0xff]  ;;  %v1512_v7 = vld [vmem:[%s2330_s21 + $0x50] sm:$0xff]  ;;  %v1514_v8 = vld [vmem:[%s2330_s21 + $0x58] sm:$0xff] }
 0x455   : >> { %1499 = vst [vmem:[%s2326_s16 + $0x18] sm:$0xff] %v1498_v0  ;;  %s1898_s25 = sshll.u32 %s3078_s24, 7  ;;  %v1516_v9 = vld [vmem:[%s2330_s21 + $0x60] sm:$0xff]  ;;  %v1518_v10 = vld [vmem:[%s2330_s21 + $0x68] sm:$0xff]  ;;  %v1520_v11 = vld [vmem:[%s2330_s21 + $0x70] sm:$0xff]  ;;  %s3059_s22 = smov %s3078_s24 }
 0x456   : >> { %1501 = vst [vmem:[%s2326_s16 + $0x20] sm:$0xff] %v1500_v1  ;;  %s1529_s0 = scalar_lea.vmem %s2650_s29, %s1898_s25 [#allocation4]   ;;  %s1530_s18 = scalar_lea.vmem %s2914_s19, %s1898_s25   ;;  %v1522_v12 = vld [vmem:[%s2330_s21 + $0x78] sm:$0xff] }
 0x457   : >> { %1503 = vst [vmem:[%s2326_s16 + $0x28] sm:$0xff] %v1502_v2  ;;  %s3058_s21 = smov %s1529_s0 }
 0x458   : >> { %1505 = vst [vmem:[%s2326_s16 + $0x30] sm:$0xff] %v1504_v3 }
 0x459   : >> { %1507 = vst [vmem:[%s2326_s16 + $0x38] sm:$0xff] %v1506_v4 }
 0x45a   : >> { %1509 = vst [vmem:[%s2326_s16 + $0x40] sm:$0xff] %v1508_v5 }
 0x45b   : >> { %1511 = vst [vmem:[%s2326_s16 + $0x48] sm:$0xff] %v1510_v6 }
 0x45c   : >> { %1513 = vst [vmem:[%s2326_s16 + $0x50] sm:$0xff] %v1512_v7 }
 0x45d   : >> { %1515 = vst [vmem:[%s2326_s16 + $0x58] sm:$0xff] %v1514_v8  ;;  %1488 = sbr.rel (!%p1485_p0) target bundleno = 1105 (0x451), region = 349 }
 0x45e   : >> { %1517 = vst [vmem:[%s2326_s16 + $0x60] sm:$0xff] %v1516_v9 }
 0x45f   : >> { %1519 = vst [vmem:[%s2326_s16 + $0x68] sm:$0xff] %v1518_v10 }
 0x460   : >> { %1521 = vst [vmem:[%s2326_s16 + $0x70] sm:$0xff] %v1520_v11 }
 0x461   : >> { %1523 = vst [vmem:[%s2326_s16 + $0x78] sm:$0xff] %v1522_v12  ;;  %s3057_s16 = smov %s1530_s18 }
 0x462 PF: > { %s2993_s1 = sand.u32 15, %s3076_s28   ;;  %s1915_s26 = sshll.u32 %s2920_s23, 7 }
 0x463   : > { %s1535_s2 = scalar_lea.vmem %s2650_s29, %s1915_s26 [#allocation4]   ;;  %s1537_s7 = scalar_lea.vmem %s2914_s19, %s1915_s26  }
 0x464   : > { %p1903_p1 = scmp.le.s32.totalorder %s2993_s1, 0 }
 0x465   : > { %s2340_s15 = smov (!%p1903_p1), %s1537_s7   ;;  %s2344_s3 = smov (!%p1903_p1), %s1535_s2  }
 0x466   : > { %1768 = sbr.rel (%p1903_p1) target bundleno = 1139 (0x473), region = 354  ;;  %s2348_s5 = smov (!%p1903_p1), 0  }
 0x467   : > { %s2352_s6 = smov (!%p1903_p1), 0  }
 0x46b LB: >> { %v1547_v13 = vld [vmem:[%s2346_s3] sm:$0xff]  ;;  %s1549_s28 = sadd.s32 1, %s2350_s5  ;;  %s1541_s6 = sadd.s32 1, %s2354_s6   ;;  %s2354_s6 = sphi %s2352_s6, %s1541_s6   ;;  %s2350_s5 = sphi %s2348_s5, %s2349_s5   ;;  %s2346_s3 = sphi %s2344_s3, %s1554_s3   ;;  %s2342_s15 = sphi %s2340_s15, %s1555_s15  }
 0x46c   : >> { %1548 = vst [vmem:[%s2342_s15] sm:$0xff] %v1547_v13  ;;  %p1550_p2 = scmp.ge.s32.totalorder %s1549_s28, %s2993_s1  ;;  %p1540_p3 = scmp.ge.s32.totalorder %s1541_s6, %s2993_s1 }
 0x46e   : >> { %s3080_s28 = smov (%p1550_p2, %s1549_s28), 0  ;;  %1543 = sbr.rel (!%p1540_p3) target bundleno = 1131 (0x46b), region = 360 }
 0x46f   : >> { %s1904_s29 = sshll.u32 %s3080_s28, 3  ;;  %s2349_s5 = smov %s3080_s28  }
 0x470   : >> { %s1554_s3 = scalar_lea.vmem %s1535_s2, %s1904_s29 [#allocation4]   ;;  %s1555_s15 = scalar_lea.vmem %s1537_s7, %s1904_s29  }
 0x473 PF: > { %p22_p5 = scmp.ge.s32.totalorder %s2447_s17, 4   ;;  %s3060_s29 = smov %s2254_s30 }
 0x474   : > { %s3061_s30 = smov %s2455_s20  ;;  %s3062_s15 = smov %s2447_s17 }
 0x475   :  { %24 = sbr.rel (!%p22_p5) target bundleno = 11 (0xb), region = 371 }

</bundles_post_ra>
